<compile_context>
chip_gen: v6e
topology: v6e:2x2x1
jax: 0.10.0
libtpu: 0.0.40
codegen_flags: <defaults>
</compile_context>

<pallas_src>
import jax
import jax.numpy as jnp
from jax.experimental import pallas as pl
from jax.experimental.pallas import tpu as pltpu


def affine_kernel(x_ref, m_ref, c_ref, o_ref):
    # x_ref: (tile_rows, 256) -- 128 samples/row, the 2 features interleaved.
    # m_ref: (256, 128)       -- collapsed deinterleave+affine weight (constant block).
    # c_ref: (1, 128)         -- collapsed bias, lane-dense.
    # o_ref: (tile_rows, 128) -- 128 outputs/row, lane-dense (unmasked stores).
    o_ref[...] = (
        jnp.dot(x_ref[...], m_ref[...], preferred_element_type=jnp.float32)
        + c_ref[...]
    )


def prepare_params(params):
    """One-time collapse of the purely-linear network (off the hot path).

    y = layer3(layer2(layer1(x))) has no nonlinearities, so it is the affine
    map  y = x @ A.T + c  with
        A = w3 @ w2 @ w1            (1, 2)
        c = w3 @ (w2 @ b1 + b2) + b3  (scalar)
    A, c are baked into
        Mw (256,128): Mw[2j, j] = A[0,0],  Mw[2j+1, j] = A[0,1]
        cvec (1,128): c broadcast over lanes
    so that with X = x.reshape(N//128, 256) (free, contiguous reshape) the
    whole forward is  Y = X @ Mw + cvec  and  Y.reshape(N, 1) == y.
    """
    (w1, b1), (w2, b2), (w3, b3) = params
    A = w3 @ w2 @ w1                       # (1, 2)
    c = w3 @ (w2 @ b1 + b2) + b3           # (1,)
    j = jnp.arange(128)
    Mw = jnp.zeros((256, 128), jnp.float32)
    Mw = Mw.at[2 * j, j].set(A[0, 0]).at[2 * j + 1, j].set(A[0, 1])
    cvec = jnp.full((1, 128), c[0], dtype=jnp.float32)
    return Mw, cvec


def model_circle_forward(x, kernel_params, *, tile_rows=2048):
    """Forward of modelCircle.  x: (N, 2) float32 -> (N, 1) float32."""
    Mw, cvec = kernel_params
    n = x.shape[0]

    # Pad the batch to a multiple of 128 samples (one packed row); padded
    # samples produce values that are sliced away below.
    n_pad = ((n + 127) // 128) * 128
    if n_pad != n:
        x = jnp.concatenate(
            [x, jnp.zeros((n_pad - n, x.shape[1]), x.dtype)], axis=0)
    rows = n_pad // 128

    # FREE reshape (row-major contiguous): row r holds samples 128r..128r+127
    # with their two features interleaved across 256 lanes.
    x_packed = x.reshape(rows, 256)

    # Block sizing: large blocks to amortize per-step overhead, but keep >= 2
    # grid steps when possible (both TensorCores on v7x) and stay well under
    # scoped-VMEM limits on all generations (~3 MB/step at tile_rows=2048).
    tr = min(tile_rows, rows)
    if rows > 8:
        tr = min(tr, ((rows + 1) // 2 + 7) // 8 * 8)
    grid = (pl.cdiv(rows, tr),)

    bytes_accessed = (rows * 256 + rows * 128 + 256 * 128 + 128) * 4
    cost = pl.CostEstimate(flops=2 * rows * 256 * 128,
                           transcendentals=0,
                           bytes_accessed=bytes_accessed)

    out_packed = pl.pallas_call(
        affine_kernel,
        out_shape=jax.ShapeDtypeStruct((rows, 128), jnp.float32),
        grid=grid,
        in_specs=[
            pl.BlockSpec((tr, 256), lambda i: (i, 0)),    # x tile, lane-dense
            pl.BlockSpec((256, 128), lambda i: (0, 0)),   # Mw (constant block)
            pl.BlockSpec((1, 128), lambda i: (0, 0)),     # cvec (constant block)
        ],
        out_specs=pl.BlockSpec((tr, 128), lambda i: (i, 0)),
        compiler_params=pltpu.CompilerParams(
            dimension_semantics=("parallel",),
            vmem_limit_bytes=32 * 1024 * 1024,
        ),
        cost_estimate=cost,
    )(x_packed, Mw, cvec)

    out = out_packed.reshape(n_pad, 1)       # free reshape, same flat order
    return out[:n] if n_pad != n else out


def init_params(key):
    """Deterministic init mirroring nn.Linear shapes (out_features, in_features)."""
    dims = [(10, 2), (10, 10), (1, 10)]
    params = []
    for i, (out_f, in_f) in enumerate(dims):
        kw, kb = jax.random.split(jax.random.fold_in(key, i))
        bound = 1.0 / jnp.sqrt(in_f)
        w = jax.random.uniform(kw, (out_f, in_f), jnp.float32, -bound, bound)
        b = jax.random.uniform(kb, (out_f,), jnp.float32, -bound, bound)
        params.append((w, b))
    return params


def reference_forward(x, params):
    # Exactly the PyTorch forward: layer_3(layer_2(layer_1(x))), no activations.
    out = x
    for w, b in params:
        out = out @ w.T + b
    return out


if __name__ == "__main__":
    key = jax.random.PRNGKey(0)
    k_x, k_p = jax.random.split(key)

    # Small input consistent with the module: (batch=8, features=2) float32.
    x = jax.random.normal(k_x, (8, 2), dtype=jnp.float32)
    params = init_params(k_p)
    kernel_params = prepare_params(params)   # one-time collapse, off the hot path

    out = model_circle_forward(x, kernel_params)
    out = jax.block_until_ready(out)

    ref = reference_forward(x, params)
    assert out.shape == (8, 1)
    assert jnp.allclose(out, ref, atol=1e-4, rtol=1e-4)
    print("KERNEL_OK")
</pallas_src>

<mosaic_0001>
module attributes {stable_mosaic.version = 11 : i64} {
  func.func @affine_kernel(%arg0: i32, %arg1: memref<1x256xf32, #tpu.memory_space<vmem>>, %arg2: memref<256x128xf32, #tpu.memory_space<vmem>>, %arg3: memref<1x128xf32, #tpu.memory_space<vmem>>, %arg4: memref<1x128xf32, #tpu.memory_space<vmem>>) attributes {dimension_semantics = [#tpu.dimension_semantics<parallel>], iteration_bounds = array<i64: 1>, scalar_prefetch = 0 : i64, scratch_operands = 0 : i64, tpu.core_type = #tpu.core_type<tc>, window_params = [{transform_indices = @transform_0, window_bounds = array<i64: 1, 256>}, {pipeline_mode = #tpu.pipeline_mode<synchronous>, transform_indices = @transform_1, window_bounds = array<i64: 256, 128>}, {pipeline_mode = #tpu.pipeline_mode<synchronous>, transform_indices = @transform_2, window_bounds = array<i64: 1, 128>}, {transform_indices = @transform_3, window_bounds = array<i64: 1, 128>}]} {
    %c0 = arith.constant 0 : index
    %c0_0 = arith.constant 0 : index
    %0 = vector.load %arg1[%c0, %c0_0] : memref<1x256xf32, #tpu.memory_space<vmem>>, vector<1x256xf32>
    %c0_1 = arith.constant 0 : index
    %c0_2 = arith.constant 0 : index
    %1 = vector.load %arg2[%c0_1, %c0_2] : memref<256x128xf32, #tpu.memory_space<vmem>>, vector<256x128xf32>
    %cst = arith.constant dense<0.000000e+00> : vector<1x128xf32>
    %2 = tpu.matmul %0, %1, %cst {dimension_numbers = #tpu.dot_dimension_numbers<[1], [0], [0], [1], [0, 0, 1, 1], [], []>} : vector<1x256xf32>, vector<256x128xf32>, vector<1x128xf32> -> vector<1x128xf32>
    %c0_3 = arith.constant 0 : index
    %c0_4 = arith.constant 0 : index
    %3 = vector.load %arg3[%c0_3, %c0_4] : memref<1x128xf32, #tpu.memory_space<vmem>>, vector<1x128xf32>
    %4 = arith.addf %2, %3 : vector<1x128xf32>
    %c0_5 = arith.constant 0 : index
    %c0_6 = arith.constant 0 : index
    %5 = vector.load %arg4[%c0_5, %c0_6] : memref<1x128xf32, #tpu.memory_space<vmem>>, vector<1x128xf32>
    tpu.vector_store %arg4[%c0_5, %c0_6], %4 {strides = array<i32>} : memref<1x128xf32, #tpu.memory_space<vmem>>, vector<1x128xf32>,
    return
  }
  func.func @transform_0(%arg0: i32) -> (i32, i32) {
    %c0_i32 = arith.constant 0 : i32
    %c0_i32_0 = arith.constant 0 : i32
    return %arg0, %c0_i32 : i32, i32
  }
  func.func @transform_1(%arg0: i32) -> (i32, i32) {
    %c0_i32 = arith.constant 0 : i32
    %c0_i32_0 = arith.constant 0 : i32
    %c0_i32_1 = arith.constant 0 : i32
    return %c0_i32, %c0_i32_0 : i32, i32
  }
  func.func @transform_2(%arg0: i32) -> (i32, i32) {
    %c0_i32 = arith.constant 0 : i32
    %c0_i32_0 = arith.constant 0 : i32
    %c0_i32_1 = arith.constant 0 : i32
    return %c0_i32, %c0_i32_0 : i32, i32
  }
  func.func @transform_3(%arg0: i32) -> (i32, i32) {
    %c0_i32 = arith.constant 0 : i32
    %c0_i32_0 = arith.constant 0 : i32
    return %arg0, %c0_i32 : i32, i32
  }
}

</mosaic_0001>

<bundles_post_ra>
// kernel: tpu_custom_call.1
= control target key start
LH: loop header
LB: loop body
LE: loop exit
PB: predicated region body
PF: predicated region fallthrough
CT: control target
= control target key end

     0   :  { %8 = vsyncpa [#allocation3], 0  ;;  %s316_s0 = inlined_call_operand.hbm [shape: f32[1,256], index: 0, kind: input, shape index: {}]   ;;  %s317_s1 = inlined_call_operand.hbm [shape: f32[256,128], index: 1, kind: input, shape index: {}]   ;;  %s318_s2 = inlined_call_operand.vmem [shape: f32[1,128], index: 2, kind: input, shape index: {}]   ;;  %s319_s3 = inlined_call_operand.hbm [shape: f32[1,128], index: 3, kind: output, shape index: {}]  }
   0x1   :  { %9 = vsyncpa [#allocation6], 0 }
   0x2   :  { %10 = vsyncpa [#allocation4], 0  ;;  %s279_s12 = smov [#allocation2]   ;;  %s280_s14 = smov [#allocation5]  }
   0x3   :  { %s17_s13 = sshll.u32 %s279_s12, 4  ;;  %s26_s15 = sshll.u32 %s280_s14, 4  ;;  %s18_s13 = int_to_ptr.vmem [resolvable:$true] %s17_s13  ;;  %s27_s15 = int_to_ptr.vmem [resolvable:$true] %s26_s15 }
   0x4   :  { %s221_s16 = scalar_lea.vmem %s18_s13, 32  ;;  %p226_p1 = scmp.lt.s32.totalorder %s18_s13, %s18_s13 }
   0x5   :  { %p222_p0 = scmp.ne.s32.totalorder %s18_s13, %s221_s16  ;;  %p227_p2 = scmp.lt.s32.totalorder %s221_s16, %s221_s16 }
   0x7   :  { %p228_p3 = por %p227_p2, %p226_p1 }
   0x9   :  { %p229_p4 = pnand %p228_p3, %p222_p0 }
   0xb   :  { %232 = shalt.err (!%p229_p4)
}
   0xc   :  { %20 = dma.hbm_to_vmem [thread:$0]  %s316_s0, 32, %s18_s13, [#allocation3]  }
   0xd   :  { %s241_s19 = scalar_lea.vmem %s27_s15, 4096  ;;  %p246_p6 = scmp.lt.s32.totalorder %s27_s15, %s27_s15 }
   0xe   :  { %p242_p5 = scmp.ne.s32.totalorder %s27_s15, %s241_s19  ;;  %p247_p7 = scmp.lt.s32.totalorder %s241_s19, %s241_s19 }
  0x10   :  { %p248_p8 = por %p247_p7, %p246_p6 }
  0x12   :  { %p249_p9 = pnand %p248_p8, %p242_p5 }
  0x14   :  { %252 = shalt.err (!%p249_p9)
}
  0x15   :  { %s281_s20 = smov 128   ;;  %s282_s21 = smov 8  }
  0x16   :  { %32 = dma.hbm_to_vmem [thread:$0]  %s317_s1, 4096, %s27_s15, [#allocation6], %s281_s20, %s281_s20, %s282_s21  }
  0x17   :  { %273 = dma.done.wait [#allocation3], 32  }
  0x18   :  { %274 = vsyncadd [#allocation3], 4294967264 }
  0x19   :  { %275 = dma.done.wait [#allocation6], 4096  }
  0x1a   :  { %276 = vsyncadd [#allocation6], 4294963200  ;;  %v76_v0 = vlaneseq  ;;  %v73_v1 = vld [vmem:[#allocation5 + $0xf8] sm:$0xff]  ;;  %v72_v3 = vld [vmem:[#allocation5 + $0xf0] sm:$0xff]  ;;  %s283_s24 = smov [#allocation7]  }
  0x1b   :  { %v57_v2 = vld [vmem:[#allocation5 + $0x78] sm:$0xff]  ;;  %173 = vmatprep.subr.mxu0 %v73_v1  ;;  %v56_v4 = vld [vmem:[#allocation5 + $0x70] sm:$0xff]  ;;  %v71_v5 = vld [vmem:[#allocation5 + $0xe8] sm:$0xff]  ;;  %s163_s25 = sshll.u32 %s283_s24, 4  ;;  %s164_s25 = int_to_ptr.vmem [resolvable:$true] %s163_s25 }
  0x1c   :  { %174 = vmatpush3.msra.mxu0 %v57_v2  ;;  %v55_v6 = vld [vmem:[#allocation5 + $0x68] sm:$0xff]  ;;  %v77_v7 = vshrl.u32 %v76_v0, 7  ;;  %v70_v8 = vld [vmem:[#allocation5 + $0xe0] sm:$0xff]  ;;  %v69_v10 = vld [vmem:[#allocation5 + $0xd8] sm:$0xff]  ;;  %s253_s26 = scalar_lea.vmem %s164_s25, 16  ;;  %s257_s27 = scalar_lea.vmem %s164_s25, 32 }
  0x1d   :  { %175 = vmatprep.subr.mxu0 %v72_v3  ;;  %v54_v9 = vld [vmem:[#allocation5 + $0x60] sm:$0xff]  ;;  %v53_v11 = vld [vmem:[#allocation5 + $0x58] sm:$0xff]  ;;  %v68_v13 = vld [vmem:[#allocation5 + $0xd0] sm:$0xff]  ;;  %p254_p10 = scmp.ne.s32.totalorder %s164_s25, %s253_s26  ;;  %p258_p11 = scmp.lt.s32.totalorder %s164_s25, %s164_s25 }
  0x1e   :  { %176 = vmatpush3.msra.mxu0 %v56_v4  ;;  %v82_v12 = vsub.s32 1, %v77_v7  ;;  %v52_v14 = vld [vmem:[#allocation5 + $0x50] sm:$0xff]  ;;  %v67_v15 = vld [vmem:[#allocation5 + $0xc8] sm:$0xff]  ;;  %v41_v16 = vld [vmem:[#allocation2] sm:$0x3]  ;;  %v78_v33 = vsub.s32 0, %v77_v7  ;;  %p259_p12 = scmp.lt.s32.totalorder %s257_s27, %s253_s26 }
  0x1f   :  { %177 = vmatprep.subr.mxu0 %v71_v5  ;;  %v51_v17 = vld [vmem:[#allocation5 + $0x48] sm:$0xff]  ;;  %v66_v19 = vld [vmem:[#allocation5 + $0xc0] sm:$0xff]  ;;  %v65_v21 = vld [vmem:[#allocation5 + $0xb8] sm:$0xff] }
  0x20   :  { %178 = vmatpush3.msra.mxu0 %v55_v6  ;;  %v83_v18 = vrot.slane %v41_v16, %v82_v12  ;;  %v50_v20 = vld [vmem:[#allocation5 + $0x40] sm:$0xff]  ;;  %v49_v22 = vld [vmem:[#allocation5 + $0x38] sm:$0xff]  ;;  %v64_v23 = vld [vmem:[#allocation5 + $0xb0] sm:$0xff]  ;;  %v79_v38 = vrot.slane %v41_v16, %v78_v33  ;;  %p260_p13 = por %p259_p12, %p258_p11 }
  0x21   :  { %179 = vmatprep.subr.mxu0 %v70_v8  ;;  %v48_v24 = vld [vmem:[#allocation5 + $0x30] sm:$0xff]  ;;  %v63_v25 = vld [vmem:[#allocation5 + $0xa8] sm:$0xff]  ;;  %v62_v27 = vld [vmem:[#allocation5 + $0xa0] sm:$0xff] }
  0x22   :  { %180 = vmatpush3.msra.mxu0 %v54_v9  ;;  %150 = vmatprep.mubr.f32.mxu0 %v83_v18  ;;  %v47_v26 = vld [vmem:[#allocation5 + $0x28] sm:$0xff]  ;;  %v46_v28 = vld [vmem:[#allocation5 + $0x20] sm:$0xff]  ;;  %v61_v29 = vld [vmem:[#allocation5 + $0x98] sm:$0xff]  ;;  %p261_p0 = pnand %p260_p13, %p254_p10 }
  0x23   :  { %181 = vmatprep.subr.mxu0 %v69_v10  ;;  %v45_v30 = vld [vmem:[#allocation5 + $0x18] sm:$0xff]  ;;  %v60_v31 = vld [vmem:[#allocation5 + $0x90] sm:$0xff]  ;;  %v59_v34 = vld [vmem:[#allocation5 + $0x88] sm:$0xff] }
  0x24   :  { %182 = vmatpush3.msra.mxu0 %v53_v11  ;;  %v44_v32 = vld [vmem:[#allocation5 + $0x10] sm:$0xff]  ;;  %v43_v35 = vld [vmem:[#allocation5 + $0x8] sm:$0xff]  ;;  %v58_v36 = vld [vmem:[#allocation5 + $0x80] sm:$0xff] }
  0x25   :  { %183 = vmatprep.subr.mxu0 %v68_v13  ;;  %v42_v37 = vld [vmem:[#allocation5] sm:$0xff]  ;;  %v74_v40 = vld [vmem:[%s318_s2] sm:$0x1] }
  0x26   :  { %184 = vmatpush3.msra.mxu0 %v52_v14 }
  0x27   :  { %185 = vmatprep.subr.mxu0 %v67_v15 }
  0x28   :  { %186 = vmatpush3.msra.mxu0 %v51_v17 }
  0x29   :  { %187 = vmatprep.subr.mxu0 %v66_v19 }
  0x2a   :  { %188 = vmatpush3.msra.mxu0 %v50_v20 }
  0x2b   :  { %189 = vmatprep.subr.mxu0 %v65_v21 }
  0x2c   :  { %190 = vmatpush3.msra.mxu0 %v49_v22 }
  0x2d   :  { %191 = vmatprep.subr.mxu0 %v64_v23 }
  0x2e   :  { %192 = vmatpush3.msra.mxu0 %v48_v24 }
  0x2f   :  { %193 = vmatprep.subr.mxu0 %v63_v25 }
  0x30   :  { %194 = vmatpush3.msra.mxu0 %v47_v26 }
  0x31   :  { %195 = vmatprep.subr.mxu0 %v62_v27 }
  0x32   :  { %196 = vmatpush3.msra.mxu0 %v46_v28 }
  0x33   :  { %197 = vmatprep.subr.mxu0 %v61_v29 }
  0x34   :  { %198 = vmatpush3.msra.mxu0 %v45_v30 }
  0x35   :  { %199 = vmatprep.subr.mxu0 %v60_v31 }
  0x36   :  { %200 = vmatpush3.msra.mxu0 %v44_v32 }
  0x37   :  { %201 = vmatprep.subr.mxu0 %v59_v34 }
  0x38   :  { %202 = vmatpush3.msra.mxu0 %v43_v35 }
  0x39   :  { %203 = vmatprep.subr.mxu0 %v58_v36 }
  0x3a   :  { %204 = vmatpush3.msra.mxu0 %v42_v37 }
  0x3b   :  { %151 = vmatmul.mubr.f32.vlgmr.msra.gmra.mxu0 %v79_v38 }
  0xfb   :  { %v205_v39 = vpop.f32.mrf.mxu0 }
  0xfd   :  { %v206_v41 = vpop.f32.mrf.mxu0 }
  0xfe   :  { %v207_v42 = vadd.f32 %v206_v41, %v205_v39 }
 0x100   :  { %v153_v43 = vadd.f32 %v207_v42, %v74_v40 }
 0x102   :  { %156 = vst [vmem:[#allocation7] sm:$0x1] %v153_v43 }
 0x103   :  { %264 = shalt.err (!%p261_p0)
}
 0x104   :  { %166 = dma.vmem_to_hbm [thread:$0]  %s164_s25, 16, %s319_s3, [#allocation4]  }
 0x105   :  { %277 = dma.done.wait [#allocation4], 16  }
 0x106   :  { %278 = vsyncadd [#allocation4], 4294967280 }
 0x107   :  { %170 = vsyncpa [#allocation3], 1 }
 0x108   :  { %171 = vsyncpa [#allocation6], 1 }
 0x109   :  { %172 = vsyncpa [#allocation4], 1 }

</bundles_post_ra>
